<compile_context>
chip_gen: v5e
topology: v5e:2x2
jax: 0.10.0
libtpu: 0.0.40
codegen_flags: <defaults>
</compile_context>

<pallas_src>
import functools

import jax
import jax.numpy as jnp
from jax.experimental import pallas as pl
from jax.experimental.pallas import tpu as pltpu

LANE = 128  # lane-dense granularity; multiples of 256 are ideal on v6e/v7x.


def _round_up(n, m):
    return ((n + m - 1) // m) * m


def mlp_kernel(x_ref, w1_ref, b1_ref, w2_ref, b2_ref, o_ref):
    # First linear: (TB, Ip) @ (Ip, Hp) -> f32 accumulate on the MXU.
    h = jnp.dot(x_ref[...], w1_ref[...], preferred_element_type=jnp.float32)
    # Bias + ReLU epilogue in f32 (v5e VPU has no bf16 elementwise).
    h = jnp.maximum(h + b1_ref[...], 0.0)
    # Second linear: cast the activation back to the weight dtype for the MXU.
    y = jnp.dot(h.astype(w2_ref.dtype), w2_ref[...],
                preferred_element_type=jnp.float32)
    o_ref[...] = (y + b2_ref[...]).astype(o_ref.dtype)


@functools.partial(jax.jit, static_argnames=("block_b",))
def mlp_forward(x, w1_t, b1, w2_t, b2, *, block_b=512):
    """Fused MLP forward.

    x:    (B, I)   activations
    w1_t: (I, H)   first weight, pre-transposed (PyTorch stores (H, I))
    b1:   (H,)     first bias
    w2_t: (H, O)   second weight, pre-transposed
    b2:   (O,)     second bias
    Returns (B, O) in x.dtype.
    """
    B, I = x.shape
    H = w1_t.shape[1]
    O = w2_t.shape[1]
    out_dtype = x.dtype

    # Lane-dense padded feature sizes; batch padded to the tile size.
    Ip = _round_up(I, LANE)
    Hp = _round_up(H, LANE)
    Op = _round_up(O, LANE)
    TB = min(block_b, _round_up(B, 8))
    Bp = _round_up(B, TB)

    compute_dtype = jnp.bfloat16  # MXU operands; accumulation stays f32.

    # Zero-pad (zeros in padded lanes/rows guarantee no leakage into results).
    xp = jnp.zeros((Bp, Ip), compute_dtype).at[:B, :I].set(
        x.astype(compute_dtype))
    w1p = jnp.zeros((Ip, Hp), compute_dtype).at[:I, :H].set(
        w1_t.astype(compute_dtype))
    w2p = jnp.zeros((Hp, Op), compute_dtype).at[:H, :O].set(
        w2_t.astype(compute_dtype))
    b1p = jnp.zeros((1, Hp), jnp.float32).at[0, :H].set(
        b1.reshape(-1).astype(jnp.float32))
    b2p = jnp.zeros((1, Op), jnp.float32).at[0, :O].set(
        b2.reshape(-1).astype(jnp.float32))

    grid = (pl.cdiv(Bp, TB),)

    # VMEM budget: double-buffered x/out tiles + resident weights + headroom.
    itemsize_c = jnp.dtype(compute_dtype).itemsize
    itemsize_o = jnp.dtype(out_dtype).itemsize
    vmem_needed = (
        2 * TB * Ip * itemsize_c          # x tiles (double-buffered)
        + 2 * TB * Op * itemsize_o        # out tiles (double-buffered)
        + 2 * (Ip * Hp + Hp * Op) * itemsize_c  # weights (allow 2 buffers)
        + 2 * (Hp + Op) * 4               # biases
        + TB * Hp * 4                     # f32 hidden intermediate
    )
    vmem_limit = int(min(max(2 * vmem_needed + (4 << 20), 32 << 20), 100 << 20))

    cost = pl.CostEstimate(
        flops=2 * Bp * (Ip * Hp + Hp * Op),
        transcendentals=0,
        bytes_accessed=(xp.size * itemsize_c + w1p.size * itemsize_c
                        + w2p.size * itemsize_c + (Hp + Op) * 4
                        + Bp * Op * itemsize_o),
    )

    yp = pl.pallas_call(
        mlp_kernel,
        out_shape=jax.ShapeDtypeStruct((Bp, Op), out_dtype),
        grid=grid,
        in_specs=[
            pl.BlockSpec((TB, Ip), lambda i: (i, 0)),   # x: tiled over batch
            pl.BlockSpec((Ip, Hp), lambda i: (0, 0)),   # W1: resident
            pl.BlockSpec((1, Hp), lambda i: (0, 0)),    # b1: resident
            pl.BlockSpec((Hp, Op), lambda i: (0, 0)),   # W2: resident
            pl.BlockSpec((1, Op), lambda i: (0, 0)),    # b2: resident
        ],
        out_specs=pl.BlockSpec((TB, Op), lambda i: (i, 0)),
        compiler_params=pltpu.CompilerParams(
            dimension_semantics=("parallel",),          # megacore split on v7x
            vmem_limit_bytes=vmem_limit,
        ),
        cost_estimate=cost,
    )(xp, w1p, b1p, w2p, b2p)

    return yp[:B, :O]


def init_mlp_params(key, input_size, hidden_size, output_size,
                    dtype=jnp.float32):
    """Mimics nn.Linear init: uniform(-1/sqrt(fan_in), +1/sqrt(fan_in))."""
    k1, k2, k3, k4 = jax.random.split(key, 4)
    bound1 = 1.0 / (input_size ** 0.5)
    bound2 = 1.0 / (hidden_size ** 0.5)
    # Stored pre-transposed as (in, out) so the kernel does x @ W + b.
    w1_t = jax.random.uniform(k1, (input_size, hidden_size), dtype,
                              -bound1, bound1)
    b1 = jax.random.uniform(k2, (hidden_size,), dtype, -bound1, bound1)
    w2_t = jax.random.uniform(k3, (hidden_size, output_size), dtype,
                              -bound2, bound2)
    b2 = jax.random.uniform(k4, (output_size,), dtype, -bound2, bound2)
    return w1_t, b1, w2_t, b2


if __name__ == "__main__":
    key = jax.random.PRNGKey(0)
    kx, kp = jax.random.split(key)

    batch = 8
    input_size = 32
    hidden_size = 64
    output_size = 16

    x = jax.random.normal(kx, (batch, input_size), jnp.float32)
    w1_t, b1, w2_t, b2 = init_mlp_params(kp, input_size, hidden_size,
                                         output_size)

    y = mlp_forward(x, w1_t, b1, w2_t, b2)
    y = jax.block_until_ready(y)
    assert y.shape == (batch, output_size)

    # Reference 1: same bf16-operand / f32-accumulate math (tight tolerance).
    xb = x.astype(jnp.bfloat16)
    w1b = w1_t.astype(jnp.bfloat16)
    w2b = w2_t.astype(jnp.bfloat16)
    h_ref = jnp.maximum(
        jnp.dot(xb, w1b, preferred_element_type=jnp.float32) + b1, 0.0)
    y_bf16_ref = (jnp.dot(h_ref.astype(jnp.bfloat16), w2b,
                          preferred_element_type=jnp.float32) + b2)
    assert jnp.allclose(y, y_bf16_ref, atol=1e-4, rtol=1e-4), (
        "mismatch vs bf16 reference")

    # Reference 2: full-f32 PyTorch-equivalent math (loose tolerance — bounds
    # the bf16 quantization error of the fused kernel).
    y_f32_ref = jnp.maximum(x @ w1_t + b1, 0.0) @ w2_t + b2
    assert jnp.allclose(y, y_f32_ref, atol=5e-2, rtol=5e-2), (
        "mismatch vs f32 reference")

    print("KERNEL_OK")
</pallas_src>

<mosaic_0001>
module attributes {stable_mosaic.version = 11 : i64} {
  func.func @mlp_kernel(%arg0: i32, %arg1: memref<8x128xbf16, #tpu.memory_space<vmem>>, %arg2: memref<128x128xbf16, #tpu.memory_space<vmem>>, %arg3: memref<1x128xf32, #tpu.memory_space<vmem>>, %arg4: memref<128x128xbf16, #tpu.memory_space<vmem>>, %arg5: memref<1x128xf32, #tpu.memory_space<vmem>>, %arg6: memref<8x128xf32, #tpu.memory_space<vmem>>) attributes {dimension_semantics = [#tpu.dimension_semantics<parallel>], iteration_bounds = array<i64: 1>, scalar_prefetch = 0 : i64, scratch_operands = 0 : i64, tpu.core_type = #tpu.core_type<tc>, window_params = [{transform_indices = @transform_0, window_bounds = array<i64: 8, 128>}, {pipeline_mode = #tpu.pipeline_mode<synchronous>, transform_indices = @transform_1, window_bounds = array<i64: 128, 128>}, {pipeline_mode = #tpu.pipeline_mode<synchronous>, transform_indices = @transform_2, window_bounds = array<i64: 1, 128>}, {pipeline_mode = #tpu.pipeline_mode<synchronous>, transform_indices = @transform_3, window_bounds = array<i64: 128, 128>}, {pipeline_mode = #tpu.pipeline_mode<synchronous>, transform_indices = @transform_4, window_bounds = array<i64: 1, 128>}, {transform_indices = @transform_5, window_bounds = array<i64: 8, 128>}]} {
    %c0 = arith.constant 0 : index
    %c0_0 = arith.constant 0 : index
    %0 = vector.load %arg1[%c0, %c0_0] : memref<8x128xbf16, #tpu.memory_space<vmem>>, vector<8x128xbf16>
    %c0_1 = arith.constant 0 : index
    %c0_2 = arith.constant 0 : index
    %1 = vector.load %arg2[%c0_1, %c0_2] : memref<128x128xbf16, #tpu.memory_space<vmem>>, vector<128x128xbf16>
    %cst = arith.constant dense<0.000000e+00> : vector<8x128xf32>
    %2 = tpu.matmul %0, %1, %cst {dimension_numbers = #tpu.dot_dimension_numbers<[1], [0], [0], [1], [0, 0, 1, 1], [], []>} : vector<8x128xbf16>, vector<128x128xbf16>, vector<8x128xf32> -> vector<8x128xf32>
    %c0_3 = arith.constant 0 : index
    %c0_4 = arith.constant 0 : index
    %3 = vector.load %arg3[%c0_3, %c0_4] : memref<1x128xf32, #tpu.memory_space<vmem>>, vector<1x128xf32>
    %4 = vector.broadcast %3 : vector<1x128xf32> to vector<8x128xf32>
    %5 = arith.addf %2, %4 : vector<8x128xf32>
    %cst_5 = arith.constant 0.000000e+00 : f32
    %6 = vector.broadcast %cst_5 : f32 to vector<8x128xf32>
    %7 = arith.maximumf %5, %6 : vector<8x128xf32>
    %8 = arith.truncf %7 : vector<8x128xf32> to vector<8x128xbf16>
    %c0_6 = arith.constant 0 : index
    %c0_7 = arith.constant 0 : index
    %9 = vector.load %arg4[%c0_6, %c0_7] : memref<128x128xbf16, #tpu.memory_space<vmem>>, vector<128x128xbf16>
    %cst_8 = arith.constant dense<0.000000e+00> : vector<8x128xf32>
    %10 = tpu.matmul %8, %9, %cst_8 {dimension_numbers = #tpu.dot_dimension_numbers<[1], [0], [0], [1], [0, 0, 1, 1], [], []>} : vector<8x128xbf16>, vector<128x128xbf16>, vector<8x128xf32> -> vector<8x128xf32>
    %c0_9 = arith.constant 0 : index
    %c0_10 = arith.constant 0 : index
    %11 = vector.load %arg5[%c0_9, %c0_10] : memref<1x128xf32, #tpu.memory_space<vmem>>, vector<1x128xf32>
    %12 = vector.broadcast %11 : vector<1x128xf32> to vector<8x128xf32>
    %13 = arith.addf %10, %12 : vector<8x128xf32>
    %c0_11 = arith.constant 0 : index
    %c0_12 = arith.constant 0 : index
    %14 = vector.load %arg6[%c0_11, %c0_12] : memref<8x128xf32, #tpu.memory_space<vmem>>, vector<8x128xf32>
    tpu.vector_store %arg6[%c0_11, %c0_12], %13 {strides = array<i32>} : memref<8x128xf32, #tpu.memory_space<vmem>>, vector<8x128xf32>,
    return
  }
  func.func @transform_0(%arg0: i32) -> (i32, i32) {
    %c0_i32 = arith.constant 0 : i32
    %c0_i32_0 = arith.constant 0 : i32
    return %arg0, %c0_i32 : i32, i32
  }
  func.func @transform_1(%arg0: i32) -> (i32, i32) {
    %c0_i32 = arith.constant 0 : i32
    %c0_i32_0 = arith.constant 0 : i32
    %c0_i32_1 = arith.constant 0 : i32
    return %c0_i32, %c0_i32_0 : i32, i32
  }
  func.func @transform_2(%arg0: i32) -> (i32, i32) {
    %c0_i32 = arith.constant 0 : i32
    %c0_i32_0 = arith.constant 0 : i32
    %c0_i32_1 = arith.constant 0 : i32
    return %c0_i32, %c0_i32_0 : i32, i32
  }
  func.func @transform_3(%arg0: i32) -> (i32, i32) {
    %c0_i32 = arith.constant 0 : i32
    %c0_i32_0 = arith.constant 0 : i32
    %c0_i32_1 = arith.constant 0 : i32
    return %c0_i32, %c0_i32_0 : i32, i32
  }
  func.func @transform_4(%arg0: i32) -> (i32, i32) {
    %c0_i32 = arith.constant 0 : i32
    %c0_i32_0 = arith.constant 0 : i32
    %c0_i32_1 = arith.constant 0 : i32
    return %c0_i32, %c0_i32_0 : i32, i32
  }
  func.func @transform_5(%arg0: i32) -> (i32, i32) {
    %c0_i32 = arith.constant 0 : i32
    %c0_i32_0 = arith.constant 0 : i32
    return %arg0, %c0_i32 : i32, i32
  }
}

</mosaic_0001>

<bundles_post_ra>
// kernel: mlp_forward.1
= control target key start
LH: loop header
LB: loop body
LE: loop exit
PB: predicated region body
PF: predicated region fallthrough
CT: control target
= control target key end

     0   :  { %s403_s0 = inlined_call_operand.vmem [shape: bf16[8,128], index: 0, kind: input, shape index: {}]   ;;  %s404_s1 = inlined_call_operand.vmem [shape: bf16[128,128], index: 1, kind: input, shape index: {}]   ;;  %s405_s2 = inlined_call_operand.vmem [shape: f32[1,128], index: 2, kind: input, shape index: {}]   ;;  %s406_s3 = inlined_call_operand.vmem [shape: bf16[128,128], index: 3, kind: input, shape index: {}]   ;;  %s407_s4 = inlined_call_operand.vmem [shape: f32[1,128], index: 4, kind: input, shape index: {}]   ;;  %s408_s5 = inlined_call_operand.hbm [shape: f32[8,128], index: 5, kind: output, shape index: {}]  }
   0x1   :  { %v274_v0 = vld [vmem:[%s404_s1 + $0x38] sm:$0xff]  ;;  %v273_v1 = vld [vmem:[%s404_s1 + $0x30] sm:$0xff]  ;;  %v272_v4 = vld [vmem:[%s404_s1 + $0x28] sm:$0xff] }
   0x2   :  { %90 = vmatpush.bf16.msra.mxu0 %v274_v0  ;;  %v282_v2 = vld [vmem:[%s406_s3 + $0x38] sm:$0xff]  ;;  %v281_v3 = vld [vmem:[%s406_s3 + $0x30] sm:$0xff] }
   0x3   :  { %173 = vmatpush.bf16.msra.mxu1 %v282_v2 }
   0x6   :  { %91 = vmatpush.bf16.msra.mxu0 %v273_v1 }
   0x7   :  { %10 = vsyncpa [#allocation3], 0  ;;  %174 = vmatpush.bf16.msra.mxu1 %v281_v3  ;;  %v280_v5 = vld [vmem:[%s406_s3 + $0x28] sm:$0xff]  ;;  %v271_v6 = vld [vmem:[%s404_s1 + $0x20] sm:$0xff]  ;;  %s312_s29 = smov [#allocation2]  }
   0x8   :  { %v279_v7 = vld [vmem:[%s406_s3 + $0x20] sm:$0xff]  ;;  %v270_v8 = vld [vmem:[%s404_s1 + $0x18] sm:$0xff]  ;;  %v269_v10 = vld [vmem:[%s404_s1 + $0x10] sm:$0xff]  ;;  %s192_s30 = sshll.u32 %s312_s29, 4  ;;  %s193_s30 = int_to_ptr.vmem [resolvable:$true] %s192_s30 }
   0x9   :  { %v278_v9 = vld [vmem:[%s406_s3 + $0x18] sm:$0xff]  ;;  %v277_v11 = vld [vmem:[%s406_s3 + $0x10] sm:$0xff]  ;;  %v268_v12 = vld [vmem:[%s404_s1 + $0x8] sm:$0xff] }
   0xa   :  { %92 = vmatpush.bf16.msra.mxu0 %v272_v4  ;;  %v267_v13 = vld [vmem:[%s404_s1] sm:$0xff]  ;;  %v276_v15 = vld [vmem:[%s406_s3 + $0x8] sm:$0xff] }
   0xb   :  { %175 = vmatpush.bf16.msra.mxu1 %v280_v5  ;;  %v21_v14 = vld [vmem:[%s403_s0] sm:$0xf] }
   0xc   :  { %v275_v16 = vld [vmem:[%s406_s3] sm:$0xff]  ;;  %s194_s3 = sshll.u32 %s408_s5, 4  ;;  %s195_s3 = int_to_ptr.hbm [resolvable:$true] %s194_s3 }
   0xd   :  { %v284_v17 = vld [vmem:[%s405_s2] ss:$0 sm:$0xff] }
   0xe   :  { %93 = vmatpush.bf16.msra.mxu0 %v271_v6  ;;  %v285_v23 = vld [vmem:[%s407_s4] ss:$0 sm:$0xff] }
   0xf   :  { %176 = vmatpush.bf16.msra.mxu1 %v279_v7 }
  0x12   :  { %94 = vmatpush.bf16.msra.mxu0 %v270_v8 }
  0x13   :  { %177 = vmatpush.bf16.msra.mxu1 %v278_v9 }
  0x16   :  { %95 = vmatpush.bf16.msra.mxu0 %v269_v10 }
  0x17   :  { %178 = vmatpush.bf16.msra.mxu1 %v277_v11 }
  0x1a   :  { %96 = vmatpush.bf16.msra.mxu0 %v268_v12 }
  0x1b   :  { %179 = vmatpush.bf16.msra.mxu1 %v276_v15 }
  0x1e   :  { %97 = vmatpush.bf16.msra.mxu0 %v267_v13 }
  0x1f   :  { %180 = vmatpush.bf16.msra.mxu1 %v275_v16 }
  0x21   :  { %98 = vmatmul.bf16.vlgmr.msra.gmra.mxu0 %v21_v14 }
  0x9e   :  { %v99_v18 = vpop.f32.mrf.mxu0 }
  0x9f   :  { %v100_v19 = vadd.f32 %v284_v17, %v99_v18 }
  0xa1   :  { %v103_v20 = vmax.f32 %v100_v19, 0.0 }
  0xa3   :  { %v104_v21 = vpack.c.bf16 %v103_v20, %v103_v20 }
  0xa5   :  { %181 = vmatmul.bf16.vlgmr.msra.gmra.mxu1 %v104_v21 }
  0xa6   :  { %v101_v22 = vpop.f32.mrf.mxu0 }
 0x122   :  { %v182_v24 = vpop.f32.mrf.mxu1 }
 0x123   :  { %v183_v25 = vadd.f32 %v285_v23, %v182_v24 }
 0x125   :  { %186 = vst [vmem:[#allocation2] sm:$0xff] %v183_v25 }
 0x126   :  { %197 = dma.vmem_to_hbm [thread:$0]  %s193_s30, 128, %s195_s3, [#allocation3]  }
 0x12a   :  { %v184_v26 = vpop.f32.mrf.mxu1 }
 0x12b   :  { %310 = dma.done.wait [#allocation3], 128  }
 0x12c   :  { %311 = vsyncadd [#allocation3], 4294967168 }
 0x12d   :  { %202 = vsyncpa [#allocation3], 1 }

</bundles_post_ra>
